<compile_context>
chip_gen: v5e
topology: v5e:2x2
jax: 0.10.0
libtpu: 0.0.40
codegen_flags: <defaults>
</compile_context>

<pallas_src>
import jax
import jax.numpy as jnp
from jax import lax
from jax.experimental import pallas as pl
from jax.experimental.pallas import tpu as pltpu


def _smooth_kernel(x_ref, o_ref):
    # x_ref / o_ref: (TP, H, W) -- TP independent planes, full spatial extent.
    x = x_ref[...].astype(jnp.float32)

    # Horizontal [1, 2, 1] pass with edge replication (lane axis).
    left = jnp.concatenate([x[:, :, :1], x[:, :, :-1]], axis=2)
    right = jnp.concatenate([x[:, :, 1:], x[:, :, -1:]], axis=2)
    h = left + 2.0 * x + right

    # Vertical [1, 2, 1] pass with edge replication (sublane axis).
    up = jnp.concatenate([h[:, :1, :], h[:, :-1, :]], axis=1)
    down = jnp.concatenate([h[:, 1:, :], h[:, -1:, :]], axis=1)

    o_ref[...] = ((up + 2.0 * h + down) * (1.0 / 16.0)).astype(o_ref.dtype)


def _choose_plane_tile(P, plane_bytes):
    """Largest divisor of P such that one input block stays ~<=2 MiB and the
    grid has >= 4 steps when P allows it (keeps both v7x cores pipelined)."""
    cap = max(1, (2 << 20) // max(plane_bytes, 1))
    if P >= 4:
        cap = min(cap, max(1, P // 4))
    cap = min(cap, P)
    tp = 1
    for d in range(1, cap + 1):
        if P % d == 0:
            tp = d
    return tp


@jax.jit
def smooth(x):
    """x: (N, C, H, W) -> blurred (N, C, H, W), matching the PyTorch Smooth module."""
    N, C, H, W = x.shape
    P = N * C
    planes = x.reshape(P, H, W)  # pure reshape, no data movement

    tp = _choose_plane_tile(P, H * W * x.dtype.itemsize)
    grid = (P // tp,)

    # TODO(synk): if a single (H, W) plane ever exceeds scoped VMEM (e.g.
    # >2k x 2k f32), add a row-tiled grid axis with 1-row halo handling.
    out = pl.pallas_call(
        _smooth_kernel,
        out_shape=jax.ShapeDtypeStruct((P, H, W), x.dtype),
        grid_spec=pltpu.PrefetchScalarGridSpec(
            num_scalar_prefetch=0,
            grid=grid,
            in_specs=[pl.BlockSpec((tp, H, W), lambda i: (i, 0, 0))],
            out_specs=pl.BlockSpec((tp, H, W), lambda i: (i, 0, 0)),
        ),
        compiler_params=pltpu.CompilerParams(
            dimension_semantics=("parallel",),
        ),
    )(planes)

    return out.reshape(N, C, H, W)


def _reference(x):
    """Pure-JAX reference matching the PyTorch Smooth module."""
    N, C, H, W = x.shape
    kernel = (jnp.array([[1.0, 2.0, 1.0],
                         [2.0, 4.0, 2.0],
                         [1.0, 2.0, 1.0]], dtype=jnp.float32) / 16.0).reshape(1, 1, 3, 3)
    xr = x.reshape(N * C, 1, H, W)
    xp = jnp.pad(xr, ((0, 0), (0, 0), (1, 1), (1, 1)), mode="edge")
    out = lax.conv_general_dilated(
        xp, kernel, window_strides=(1, 1), padding="VALID",
        dimension_numbers=("NCHW", "OIHW", "NCHW"))
    return out.reshape(N, C, H, W)


if __name__ == "__main__":
    key = jax.random.PRNGKey(0)
    N, C, H, W = 2, 4, 16, 16
    x = jax.random.normal(key, (N, C, H, W), dtype=jnp.float32)

    out = smooth(x)
    out = jax.block_until_ready(out)

    ref = _reference(x)
    assert out.shape == (N, C, H, W)
    assert jnp.allclose(out, ref, atol=1e-5, rtol=1e-5), "mismatch vs reference blur"

    print("KERNEL_OK")
</pallas_src>

<mosaic_0001>
module attributes {stable_mosaic.version = 11 : i64} {
  func.func @_smooth_kernel(%arg0: i32, %arg1: memref<2x16x16xf32, #tpu.memory_space<vmem>>, %arg2: memref<2x16x16xf32, #tpu.memory_space<vmem>>) attributes {dimension_semantics = [#tpu.dimension_semantics<parallel>], iteration_bounds = array<i64: 4>, scalar_prefetch = 0 : i64, scratch_operands = 0 : i64, tpu.core_type = #tpu.core_type<tc>, window_params = [{transform_indices = @transform_0, window_bounds = array<i64: 2, 16, 16>}, {transform_indices = @transform_1, window_bounds = array<i64: 2, 16, 16>}]} {
    %c0 = arith.constant 0 : index
    %c0_0 = arith.constant 0 : index
    %c0_1 = arith.constant 0 : index
    %0 = vector.load %arg1[%c0, %c0_0, %c0_1] : memref<2x16x16xf32, #tpu.memory_space<vmem>>, vector<2x16x16xf32>
    %1 = vector.extract_strided_slice %0 {offsets = [0, 0, 0], sizes = [2, 16, 1], strides = [1, 1, 1]} : vector<2x16x16xf32> to vector<2x16x1xf32>
    %2 = vector.extract_strided_slice %0 {offsets = [0, 0, 0], sizes = [2, 16, 15], strides = [1, 1, 1]} : vector<2x16x16xf32> to vector<2x16x15xf32>
    %3 = tpu.concatenate %1, %2 in 2 : vector<2x16x1xf32>, vector<2x16x15xf32> -> vector<2x16x16xf32>
    %4 = vector.extract_strided_slice %0 {offsets = [0, 0, 1], sizes = [2, 16, 15], strides = [1, 1, 1]} : vector<2x16x16xf32> to vector<2x16x15xf32>
    %5 = vector.extract_strided_slice %0 {offsets = [0, 0, 15], sizes = [2, 16, 1], strides = [1, 1, 1]} : vector<2x16x16xf32> to vector<2x16x1xf32>
    %6 = tpu.concatenate %4, %5 in 2 : vector<2x16x15xf32>, vector<2x16x1xf32> -> vector<2x16x16xf32>
    %cst = arith.constant 2.000000e+00 : f32
    %7 = vector.broadcast %cst : f32 to vector<2x16x16xf32>
    %8 = arith.mulf %7, %0 : vector<2x16x16xf32>
    %9 = arith.addf %3, %8 : vector<2x16x16xf32>
    %10 = arith.addf %9, %6 : vector<2x16x16xf32>
    %11 = vector.extract_strided_slice %10 {offsets = [0, 0, 0], sizes = [2, 1, 16], strides = [1, 1, 1]} : vector<2x16x16xf32> to vector<2x1x16xf32>
    %12 = vector.extract_strided_slice %10 {offsets = [0, 0, 0], sizes = [2, 15, 16], strides = [1, 1, 1]} : vector<2x16x16xf32> to vector<2x15x16xf32>
    %13 = tpu.concatenate %11, %12 in 1 : vector<2x1x16xf32>, vector<2x15x16xf32> -> vector<2x16x16xf32>
    %14 = vector.extract_strided_slice %10 {offsets = [0, 1, 0], sizes = [2, 15, 16], strides = [1, 1, 1]} : vector<2x16x16xf32> to vector<2x15x16xf32>
    %15 = vector.extract_strided_slice %10 {offsets = [0, 15, 0], sizes = [2, 1, 16], strides = [1, 1, 1]} : vector<2x16x16xf32> to vector<2x1x16xf32>
    %16 = tpu.concatenate %14, %15 in 1 : vector<2x15x16xf32>, vector<2x1x16xf32> -> vector<2x16x16xf32>
    %cst_2 = arith.constant 2.000000e+00 : f32
    %17 = vector.broadcast %cst_2 : f32 to vector<2x16x16xf32>
    %18 = arith.mulf %17, %10 : vector<2x16x16xf32>
    %19 = arith.addf %13, %18 : vector<2x16x16xf32>
    %20 = arith.addf %19, %16 : vector<2x16x16xf32>
    %cst_3 = arith.constant 6.250000e-02 : f32
    %21 = vector.broadcast %cst_3 : f32 to vector<2x16x16xf32>
    %22 = arith.mulf %20, %21 : vector<2x16x16xf32>
    %c0_4 = arith.constant 0 : index
    %c0_5 = arith.constant 0 : index
    %c0_6 = arith.constant 0 : index
    %23 = vector.load %arg2[%c0_4, %c0_5, %c0_6] : memref<2x16x16xf32, #tpu.memory_space<vmem>>, vector<2x16x16xf32>
    tpu.vector_store %arg2[%c0_4, %c0_5, %c0_6], %22 {strides = array<i32>} : memref<2x16x16xf32, #tpu.memory_space<vmem>>, vector<2x16x16xf32>,
    return
  }
  func.func @transform_0(%arg0: i32) -> (i32, i32, i32) {
    %c0_i32 = arith.constant 0 : i32
    %c0_i32_0 = arith.constant 0 : i32
    %c0_i32_1 = arith.constant 0 : i32
    return %arg0, %c0_i32, %c0_i32_0 : i32, i32, i32
  }
  func.func @transform_1(%arg0: i32) -> (i32, i32, i32) {
    %c0_i32 = arith.constant 0 : i32
    %c0_i32_0 = arith.constant 0 : i32
    %c0_i32_1 = arith.constant 0 : i32
    return %arg0, %c0_i32, %c0_i32_0 : i32, i32, i32
  }
}

</mosaic_0001>

<bundles_post_ra>
// kernel: smooth.1
= control target key start
LH: loop header
LB: loop body
LE: loop exit
PB: predicated region body
PF: predicated region fallthrough
CT: control target
= control target key end

     0   :  { %6 = vsyncpa [#allocation3], 0  ;;  %s670_s0 = inlined_call_operand.hbm [shape: f32[8,16,16], index: 0, kind: input, shape index: {}]   ;;  %s671_s1 = inlined_call_operand.hbm [shape: f32[8,16,16], index: 1, kind: output, shape index: {}]  }
   0x1   :  { %8 = vsyncpa [#allocation3 + $0x1], 0 }
   0x2   :  { %9 = vsyncpa [#allocation4], 0 }
   0x3   :  { %11 = vsyncpa [#allocation4 + $0x1], 0  ;;  %s521_s6 = smov 0   ;;  %s523_s7 = smov 0  }
   0x4   :  { %s525_s8 = smov 0   ;;  %s527_s9 = smov 0  }
   0x5 LB: > { %s542_s10 = sadd.s32 4294967295, %s503_s9   ;;  %s335_s11 = sadd.s32 4294967294, %s503_s9   ;;  %s503_s9 = sphi %s527_s9, %s680_s9   ;;  %s499_s8 = sphi %s525_s8, %s679_s8   ;;  %s495_s7 = sphi %s523_s7, %s678_s7   ;;  %s491_s6 = sphi %s521_s6, %s677_s6  }
   0x6   : > { %s546_s12 = sadd.s32 1, %s503_s9   ;;  %s24_s13 = sadd.s32 1, %s499_s8 }
   0x7   : > { %s21_s14 = ssub.s32 %s503_s9, %s546_s12  ;;  %p31_p0 = scmp.ne.s32.totalorder %s499_s8, %s495_s7 }
   0x8   : > { %p22_p1 = scmp.eq.s32.totalorder %s21_s14, 0  ;;  %p32_p2 = scmp.eq.s32.totalorder %s503_s9, 0 }
   0x9   : > { %p37_p3 = scmp.ne.s32.totalorder %s495_s7, %s491_s6  ;;  %p38_p4 = scmp.eq.s32.totalorder %s542_s10, 0 }
   0xa   : > { %s558_s15 = scalar_select %p22_p1, %s499_s8, %s24_s13  }
   0xb   : > { %p560_p5 = por %p32_p2, %p31_p0  ;;  %p564_p6 = por %p38_p4, %p37_p3 }
   0xc   : > { %p61_p7 = scmp.eq.s32.totalorder %s542_s10, 3  ;;  %p67_p8 = scmp.eq.s32.totalorder %s335_s11, 3 }
   0xd   : > { %p367_p9 = scmp.lt.s32.totalorder %s503_s9, 4  ;;  %s87_s20 = sand.u32 1, %s499_s8  }
   0xe   : > { %p570_p10 = por %p61_p7, %p31_p0  ;;  %p574_p11 = por %p67_p8, %p37_p3 }
   0xf   : > { %s352_s21 = sshll.u32 %s503_s9, 5  ;;  %s338_s22 = sshll.u32 %s87_s20, 5 }
  0x10   : > { %s97_s25 = scalar_lea.hbm %s670_s0, %s352_s21  ;;  %s91_s27 = scalar_lea.vmem [#allocation2], %s338_s22 }
  0x11   : > { %s98_s26 = sshll.u32 %s97_s25, 4  ;;  %s100_s28 = sshll.u32 %s91_s27, 4  ;;  %s99_s26 = int_to_ptr.hbm [resolvable:$true] %s98_s26  ;;  %s101_s28 = int_to_ptr.vmem [resolvable:$true] %s100_s28 }
  0x12   : > { %p585_p12 = pnand %p367_p9, %p560_p5  ;;  %p342_p13 = scmp.ge.s32.totalorder %s503_s9, 1 }
  0x13   : > { %p108_p0 = scmp.lt.s32.totalorder %s503_s9, 5  ;;  %s88_s30 = scalar_lea.sflag [#allocation3], %s87_s20 }
  0x14   : > { %s407_s2 = sshra.s32 %s99_s26, 4  ;;  %p411_p2 = pneg %p585_p12  ;;  %s408_s2 = int_to_ptr.hbm [resolvable:$true] %s407_s2 }
  0x15   : > { %s409_s3 = scalar_lea.hbm %s408_s2, 32  ;;  %s414_s11 = scalar_lea.hbm %s670_s0, 128 }
  0x16   : > { %p410_p1 = scmp.ne.s32.totalorder %s408_s2, %s409_s3  ;;  %p415_p5 = scmp.lt.s32.totalorder %s408_s2, %s670_s0 }
  0x17   : > { %p416_p7 = scmp.lt.s32.totalorder %s414_s11, %s409_s3 }
  0x18   : > { %p412_p3 = pnand %p411_p2, %p410_p1 }
  0x19   : > { %p417_p8 = por %p416_p7, %p415_p5 }
  0x1a   : > { %p413_p4 = pneg %p412_p3 }
  0x1c   : > { %p418_p9 = pnand %p417_p8, %p413_p4 }
  0x1e   : > { %421 = shalt.err (!%p418_p9)
}
  0x1f   : > { %s505_s16 = smov 128   ;;  %s506_s20 = smov 8  }
  0x20   : > { %362 = dma.hbm_to_vmem [thread:$0]  (!%p585_p12), %s99_s26, 512, %s101_s28, %s88_s30, %s505_s16, %s505_s16, %s506_s20  }
  0x21   : > { %p109_p1 = pnand %p342_p13, %p108_p0 }
  0x22   : > { %s606_s21 = sand.u32 (!%p109_p1), 1, %s495_s7  }
  0x23   : > { %112 = sbr.rel (%p109_p1) target bundleno = 190 (0xbe), region = 24  ;;  %s343_s22 = sshll.u32 (!%p109_p1), %s606_s21, 5 }
  0x24   : > { %s115_s23 = scalar_lea.sflag (!%p109_p1), [#allocation3], %s606_s21  ;;  %s118_s24 = scalar_lea.vmem (!%p109_p1), [#allocation2], %s343_s22 }
  0x28   : > { %482 = dma.done.wait (%p564_p6), %s115_s23, 512  }
  0x29   : > { %484 = vsyncadd (%p564_p6), %s115_s23, 4294966784  ;;  %v142_v0 = vld [vmem:[%s118_s24 + $0x10] sm:$0xff]  ;;  %v140_v1 = vld [vmem:[%s118_s24] sm:$0xff]  ;;  %s507_s25 = smov 1   ;;  %s508_s26 = smov 127   ;;  %vm160_vm0 = vcmask 7168  }
  0x2a   : > { %152 = vrot.lane.b32.xlu1 %v142_v0, %s507_s25  ;;  %148 = vrot.lane.b32.xlu0 %v140_v1, %s507_s25  ;;  %v143_v2 = vld [vmem:[%s118_s24 + $0x18] sm:$0xff]  ;;  %v141_v3 = vld [vmem:[%s118_s24 + $0x8] sm:$0xff]  ;;  %v182_v5 = vmul.f32 2.0, %v140_v1  ;;  %vm177_vm1 = vcmask 121856   ;;  %vm198_vm2 = vcmask 1040384   ;;  %v184_v21 = vmul.f32 2.0, %v142_v0 }
  0x2b   : > { %165 = vrot.lane.b32.xlu2 %v140_v1, %s508_s26  ;;  %v183_v12 = vmul.f32 2.0, %v141_v3  ;;  %v185_v23 = vmul.f32 2.0, %v143_v2  ;;  %vm211_vm3 = vcmask 1046528   ;;  %vm240_vm4 = vcmask 130048   ;;  %s354_s17 = sshll.u32 %s542_s10, 5  ;;  %s137_s27 = scalar_lea.vmem [#allocation5], %s343_s22 }
  0x2c   : > { %s258_s30 = scalar_lea.hbm %s671_s1, %s354_s17  ;;  %s259_s10 = sshll.u32 %s137_s27, 4  ;;  %s260_s10 = int_to_ptr.vmem [resolvable:$true] %s259_s10 }
  0x2d   : > { %s261_s2 = sshll.u32 %s258_s30, 4  ;;  %s246_s3 = scalar_lea.sflag [#allocation4], %s606_s21  ;;  %s262_s2 = int_to_ptr.hbm [resolvable:$true] %s261_s2 }
  0x2e   : > { %s451_s4 = sshra.s32 %s262_s2, 4  ;;  %s457_s14 = scalar_lea.hbm %s671_s1, 128  ;;  %s452_s4 = int_to_ptr.hbm [resolvable:$true] %s451_s4 }
  0x2f   : > { %s453_s5 = scalar_lea.hbm %s452_s4, 32  ;;  %p458_p0 = scmp.lt.s32.totalorder %s452_s4, %s671_s1 }
  0x30   : > { %p454_p6 = scmp.ne.s32.totalorder %s452_s4, %s453_s5  ;;  %p459_p2 = scmp.lt.s32.totalorder %s457_s14, %s453_s5 }
  0x32   : > { %154 = vrot.lane.b32.xlu1 %v143_v2, %s507_s25  ;;  %150 = vrot.lane.b32.xlu0 %v141_v3, %s507_s25  ;;  %p455_p12 = pnand %p454_p6, %p570_p10  ;;  %p460_p3 = por %p459_p2, %p458_p0 }
  0x33   : > { %167 = vrot.lane.b32.xlu2 %v141_v3, %s508_s26 }
  0x34   : > { %p456_p13 = pneg %p455_p12 }
  0x36   : > { %p461_p4 = pnand %p460_p3, %p456_p13 }
  0x3a   : > { %171 = vrot.lane.b32.xlu1 %v143_v2, %s508_s26  ;;  %169 = vrot.lane.b32.xlu0 %v142_v0, %s508_s26 }
  0x85   : > { %v166_v4 = vpop.permute.xlu2 %165 }
  0x86   : > { %v178_v9 = vsel %vm177_vm1, %v166_v4, %v140_v1 }
  0x8d   : > { %v168_v13 = vpop.permute.xlu2 %167 }
  0x8e   : > { %v179_v18 = vsel %vm177_vm1, %v168_v13, %v141_v3 }
  0x9c   : > { %v153_v6 = vpop.permute.xlu1 %152  ;;  %v149_v7 = vpop.permute.xlu0 %148 }
  0x9d   : > { %v161_v8 = vsel %vm160_vm0, %v140_v1, %v149_v7  ;;  %v163_v25 = vsel %vm160_vm0, %v142_v0, %v153_v6 }
  0x9e   : > { %v186_v10 = vadd.f32 %v182_v5, %v161_v8  ;;  %v188_v32 = vadd.f32 %v184_v21, %v163_v25 }
  0xa0   : > { %v190_v11 = vadd.f32 %v186_v10, %v178_v9 }
  0xa2   : > { %v199_v14 = vrot.slane %v190_v11, 7  ;;  %v224_v20 = vmul.f32 2.0, %v190_v11  ;;  %v212_v27 = vrot.slane %v190_v11, 1 }
  0xa4   : > { %v155_v15 = vpop.permute.xlu1 %154  ;;  %v151_v16 = vpop.permute.xlu0 %150  ;;  %v209_v22 = vsel %vm198_vm2, %v190_v11, %v199_v14 }
  0xa5   : > { %v162_v17 = vsel %vm160_vm0, %v141_v3, %v151_v16  ;;  %v164_v26 = vsel %vm160_vm0, %v143_v2, %v155_v15  ;;  %v228_v31 = vadd.f32 %v224_v20, %v209_v22 }
  0xa6   : > { %v187_v19 = vadd.f32 %v183_v12, %v162_v17  ;;  %v189_v33 = vadd.f32 %v185_v23, %v164_v26 }
  0xa8   : > { %v191_v24 = vadd.f32 %v187_v19, %v179_v18 }
  0xaa   : > { %v200_v28 = vrot.slane %v191_v24, 7  ;;  %v213_v29 = vrot.slane %v191_v24, 1  ;;  %v225_v30 = vmul.f32 2.0, %v191_v24 }
  0xac   : > { %v201_v34 = vsel %vm198_vm2, %v199_v14, %v200_v28  ;;  %v214_v35 = vsel %vm211_vm3, %v212_v27, %v213_v29  ;;  %v172_v36 = vpop.permute.xlu1 %171  ;;  %v170_v37 = vpop.permute.xlu0 %169  ;;  %v222_v42 = vsel %vm211_vm3, %v213_v29, %v191_v24 }
  0xad   : > { %v229_v38 = vadd.f32 %v225_v30, %v201_v34  ;;  %v232_v39 = vadd.f32 %v228_v31, %v214_v35  ;;  %v181_v40 = vsel %vm177_vm1, %v172_v36, %v143_v2  ;;  %v180_v41 = vsel %vm177_vm1, %v170_v37, %v142_v0 }
  0xae   : > { %v193_v43 = vadd.f32 %v189_v33, %v181_v40  ;;  %v192_v44 = vadd.f32 %v188_v32, %v180_v41 }
  0xaf   : > { %v233_v45 = vadd.f32 %v229_v38, %v222_v42  ;;  %v236_v46 = vmul.f32 0.0625, %v232_v39 }
  0xb0   : > { %v203_v47 = vrot.slane %v193_v43, 7  ;;  %v216_v48 = vrot.slane %v193_v43, 1  ;;  %v227_v49 = vmul.f32 2.0, %v193_v43  ;;  %v202_v50 = vrot.slane %v192_v44, 7 }
  0xb1   : > { %v237_v51 = vmul.f32 0.0625, %v233_v45  ;;  %241 = vst.msk [vmem:[%s137_s27] sm:$0xff] %vm240_vm4, %v236_v46  ;;  %v215_v52 = vrot.slane %v192_v44, 1  ;;  %v226_v53 = vmul.f32 2.0, %v192_v44 }
  0xb2   : > { %v204_v54 = vsel %vm198_vm2, %v202_v50, %v203_v47  ;;  %v210_v55 = vsel %vm198_vm2, %v192_v44, %v202_v50  ;;  %v223_v58 = vsel %vm211_vm3, %v216_v48, %v193_v43 }
  0xb3   : > { %242 = vst.msk [vmem:[%s137_s27 + $0x8] sm:$0xff] %vm240_vm4, %v237_v51  ;;  %v230_v56 = vadd.f32 %v226_v53, %v210_v55  ;;  %v231_v57 = vadd.f32 %v227_v49, %v204_v54  ;;  %v217_v59 = vsel %vm211_vm3, %v215_v52, %v216_v48 }
  0xb5   : > { %v234_v60 = vadd.f32 %v230_v56, %v217_v59  ;;  %v235_v61 = vadd.f32 %v231_v57, %v223_v58 }
  0xb7   : > { %v238_v62 = vmul.f32 0.0625, %v234_v60  ;;  %v239_v63 = vmul.f32 0.0625, %v235_v61 }
  0xb9   : > { %243 = vst.msk [vmem:[%s137_s27 + $0x10] sm:$0xff] %vm240_vm4, %v238_v62 }
  0xba   : > { %244 = vst.msk [vmem:[%s137_s27 + $0x18] sm:$0xff] %vm240_vm4, %v239_v63 }
  0xbb   : > { %464 = shalt.err (!%p461_p4)
}
  0xbc   : > { %s509_s21 = smov 128   ;;  %s510_s22 = smov 8  }
  0xbd   : > { %357 = dma.vmem_to_hbm [thread:$0]  (%p570_p10), %s260_s10, 512, %s262_s2, %s246_s3, %s509_s21, %s509_s21, %s510_s22  }
  0xbe PF: > { %p368_p5 = scmp.ge.s32.totalorder %s503_s9, 2  ;;  %s276_s23 = sand.u32 1, %s491_s6  }
  0xbf   : > { %s277_s24 = scalar_lea.sflag [#allocation4], %s276_s23 }
  0xc0   : > { %p364_p7 = pnand %p368_p5, %p574_p11 }
  0xc2   : > { %p365_p8 = pneg %p364_p7 }
  0xc4   : > { %486 = dma.done.wait (%p365_p8), %s277_s24, 512  }
  0xc5   : > { %488 = vsyncadd (%p365_p8), %s277_s24, 4294966784  ;;  %p14_p9 = scmp.ge.s32.totalorder %s546_s12, 6   ;;  %s677_s6 = smov %s495_s7 }
  0xc6   : > { %s678_s7 = smov %s499_s8  ;;  %s679_s8 = smov %s558_s15 }
  0xc7   : > { %s680_s9 = smov %s546_s12  ;;  %16 = sbr.rel (!%p14_p9) target bundleno = 5 (0x5), region = 69 }
  0xcc   :  { %283 = vsyncpa [#allocation3], 1 }
  0xcd   :  { %285 = vsyncpa [#allocation3 + $0x1], 1 }
  0xce   :  { %286 = vsyncpa [#allocation4], 1 }
  0xcf   :  { %288 = vsyncpa [#allocation4 + $0x1], 1 }

</bundles_post_ra>
